<compile_context>
chip_gen: v7x
topology: tpu7x:2x2x1
jax: 0.10.0
libtpu: 0.0.40
codegen_flags: <defaults>
</compile_context>

<pallas_src>
import functools

import jax
import jax.numpy as jnp
from jax import lax
from jax.experimental import pallas as pl
from jax.experimental.pallas import tpu as pltpu


def _round_up(n, m):
    return (n + m - 1) // m * m


def _pad_to(x, shape):
    pads = [(0, t - c) for c, t in zip(x.shape, shape)]
    if any(p for _, p in pads):
        return jnp.pad(x, pads)
    return x


def _sga_kernel(
    mask_ref,                  # [bt, 1, 1]  int32  (valid sem tokens per batch elem)
    i_ref,                     # [bt, n_obj_p, obj_dim_p]  bf16
    s_ref,                     # [bt, n_sem_p, sem_dim_p]  f32
    wim_ref, bim_ref,          # [obj_dim_p, e_is8] bf16, [1, e_is8] f32
    wf_ref, bfu_ref,           # fused [sem_dim_p, wf_w] bf16, [1, wf_w] f32
    wca_ref, wcb_ref, bc_ref,  # [e_is8, sem_dim_p] bf16 x2, [1, sem_dim_p] f32
    wsb_ref,                   # [sem_dim_p, sem_dim_p] bf16
    out_ref,                   # [bt, n_sem_p, sem_dim_p]  f32
    *,
    bt,                        # static: batch elements fused per grid step
    n_obj_valid,               # static: real (unpadded) number of objects
    e_is8, e_ss8, nb_p,        # static: fused-weight segment widths / offsets
):
    f32 = jnp.float32
    bf16 = jnp.bfloat16
    neg_big = jnp.float32(-1e30)
    relu = jax.nn.relu

    _, n_obj_p, obj_dim_p = i_ref.shape
    _, n_sem_p, sem_dim_p = s_ref.shape

    # ---- flattened activations (leading-dim merges at 8-sublane boundaries
    #      -> views, no VMEM copy); big M fills the MXU -----------------------
    i_flat = i_ref[...].reshape(bt * n_obj_p, obj_dim_p)           # bf16
    s_flat32 = s_ref[...].reshape(bt * n_sem_p, sem_dim_p)         # f32 (residual)
    s_flat = s_flat32.astype(bf16)

    # ---- image-side projection (narrow e_is8 output, no padded columns) -----
    i_proj = relu(jnp.dot(i_flat, wim_ref[...], preferred_element_type=f32)
                  + bim_ref[...])                                   # (bt*n_obj_p, e_is8)
    i_proj_b = i_proj.astype(bf16).reshape(bt, n_obj_p, e_is8)

    # ---- fused semantic-side projections: ONE MXU pass over s_flat ----------
    fused = jnp.dot(s_flat, wf_ref[...], preferred_element_type=f32) + bfu_ref[...]
    o_b = e_is8
    o_c = e_is8 + e_ss8
    s_proj = relu(fused[:, :e_is8])                    # sem_embed_is(s)
    s1 = relu(fused[:, o_b:o_b + e_ss8])               # sem_embed_ss_1(s)
    s2 = relu(fused[:, o_c:o_c + e_ss8])               # sem_embed_ss_2(s)
    hss_pre = fused[:, nb_p:nb_p + sem_dim_p]          # s @ wsa + bs   (pre-ReLU)

    s_proj_bf = s_proj.astype(bf16)
    s_proj_b = s_proj_bf.reshape(bt, n_sem_p, e_is8)
    s1_b = s1.astype(bf16).reshape(bt, n_sem_p, e_ss8)
    s2_b = s2.astype(bf16).reshape(bt, n_sem_p, e_ss8)
    s_b = s_flat.reshape(bt, n_sem_p, sem_dim_p)

    # ---- image-semantic attention (batched, contract last dims, no .T) ------
    sim = lax.dot_general(s_proj_b, i_proj_b, (((2,), (2,)), ((0,), (0,))),
                          preferred_element_type=f32)               # [bt, N_sem, N_obj]
    if n_obj_valid < n_obj_p:
        obj_col = lax.broadcasted_iota(jnp.int32, sim.shape, 2)
        sim = jnp.where(obj_col < n_obj_valid, sim, neg_big)        # mask padded objects
    sim = sim - jnp.max(sim, axis=-1, keepdims=True)
    p = jnp.exp(sim)
    att = (p * pl.reciprocal(jnp.sum(p, axis=-1, keepdims=True), approx=True)).astype(bf16)
    i_att = lax.dot_general(att, i_proj_b, (((2,), (1,)), ((0,), (0,))),
                            preferred_element_type=f32)             # [bt, N_sem, e_is8]

    # ---- semantic-semantic attention (vectorized per-batch mask) ------------
    sim2 = lax.dot_general(s1_b, s2_b, (((2,), (2,)), ((0,), (0,))),
                           preferred_element_type=f32)              # [bt, N_sem, N_sem]
    mask_b = mask_ref[...]                                          # (bt, 1, 1) int32
    col = lax.broadcasted_iota(jnp.int32, sim2.shape, 2)
    sim2 = jnp.where(col < mask_b, sim2, neg_big)                   # single where, no stack
    sim2 = sim2 - jnp.max(sim2, axis=-1, keepdims=True)
    p2 = jnp.exp(sim2)
    att2 = (p2 * pl.reciprocal(jnp.sum(p2, axis=-1, keepdims=True), approx=True)).astype(bf16)
    i_att2 = lax.dot_general(att2, s_b, (((2,), (1,)), ((0,), (0,))),
                             preferred_element_type=f32)            # [bt, N_sem, sem_dim_p]

    # ---- combined projections (concat == split-weight sum), flattened -------
    i_att_flat = i_att.astype(bf16).reshape(bt * n_sem_p, e_is8)
    h_is = relu(jnp.dot(s_proj_bf, wca_ref[...], preferred_element_type=f32)
                + jnp.dot(i_att_flat, wcb_ref[...], preferred_element_type=f32)
                + bc_ref[...])
    i_att2_flat = i_att2.astype(bf16).reshape(bt * n_sem_p, sem_dim_p)
    h_ss = relu(hss_pre + jnp.dot(i_att2_flat, wsb_ref[...], preferred_element_type=f32))

    out = s_flat32 + h_is + h_ss
    out_ref[...] = out.reshape(bt, n_sem_p, sem_dim_p)              # lane-dense store


def semantic_graph_aggregator(i, s, mask_s, params, *, bt=None, vmem_limit_bytes=None):
    B, n_obj, obj_dim = i.shape
    _, n_sem, sem_dim = s.shape
    e_is = params["wim"].shape[1]
    e_ss = params["w1"].shape[1]

    # (8,128)-aligned padded sizes.  N_obj -> x128 (lane axis of sim/att and
    # MXU K of att@i_proj); semantic token dim -> x8; feature dims -> x128.
    obj_dim_p = _round_up(obj_dim, 128)
    sem_dim_p = _round_up(sem_dim, 128)
    n_obj_p = _round_up(n_obj, 128)
    n_sem_p = _round_up(n_sem, 8)
    e_is8 = _round_up(e_is, 8)
    e_ss8 = _round_up(e_ss, 8)
    nb = e_is8 + 2 * e_ss8                 # densely packed narrow heads
    nb_p = _round_up(nb, 128)              # wsa segment starts 128-aligned
    wf_w = nb_p + sem_dim_p                # fused weight width (128-multiple)

    # ---- batch-fusion heuristic ---------------------------------------------
    if bt is None:
        bt = max(1, 512 // n_sem_p)        # ~512 MXU rows (v6e sweet spot)
        if B >= 2:
            bt = min(bt, (B + 1) // 2)     # keep >= 2 grid steps (both v7x TCs busy)
        else:
            bt = 1
        for cand in range(bt, 0, -1):      # prefer bt | B (no padded-batch work, v5e)
            if B % cand == 0:
                if 2 * cand >= bt:
                    bt = cand
                break
    bt = max(1, min(bt, B))
    bp = _round_up(B, bt)
    num_steps = bp // bt

    bf16, f32 = jnp.bfloat16, jnp.float32

    i_p = _pad_to(i.astype(bf16), (bp, n_obj_p, obj_dim_p))
    s_p = _pad_to(s.astype(f32), (bp, n_sem_p, sem_dim_p))
    mask3 = _pad_to(mask_s.astype(jnp.int32), (bp,)).reshape(bp, 1, 1)

    wca, wcb = params["wc"][:e_is], params["wc"][e_is:]
    wsa, wsb = params["ws"][:sem_dim], params["ws"][sem_dim:]

    def padw(x, r, c):
        return _pad_to(x.astype(f32), (r, c))

    # fused weight: [wsm | w1 | w2 | 0-pad | wsa]  (all sharing s as LHS)
    segs_w = [padw(params["wsm"], sem_dim_p, e_is8),
              padw(params["w1"], sem_dim_p, e_ss8),
              padw(params["w2"], sem_dim_p, e_ss8)]
    segs_b = [_pad_to(params["bsm"].astype(f32), (1, e_is8)),
              _pad_to(params["b1"].astype(f32), (1, e_ss8)),
              _pad_to(params["b2"].astype(f32), (1, e_ss8))]
    if nb_p > nb:
        segs_w.append(jnp.zeros((sem_dim_p, nb_p - nb), f32))
        segs_b.append(jnp.zeros((1, nb_p - nb), f32))
    segs_w.append(padw(wsa, sem_dim_p, sem_dim_p))
    segs_b.append(_pad_to(params["bs"].astype(f32), (1, sem_dim_p)))
    wf = jnp.concatenate(segs_w, axis=1).astype(bf16)
    bfu = jnp.concatenate(segs_b, axis=1)

    operands = (
        mask3, i_p, s_p,
        padw(params["wim"], obj_dim_p, e_is8).astype(bf16),
        _pad_to(params["bim"].astype(f32), (1, e_is8)),
        wf, bfu,
        padw(wca, e_is8, sem_dim_p).astype(bf16),
        padw(wcb, e_is8, sem_dim_p).astype(bf16),
        _pad_to(params["bc"].astype(f32), (1, sem_dim_p)),
        padw(wsb, sem_dim_p, sem_dim_p).astype(bf16),
    )

    def act_spec(n, d):
        return pl.BlockSpec((bt, n, d), lambda g: (g, 0, 0))

    def w_spec(shape):
        # grid-invariant weights: fetched once, single-buffered (VMEM saving).
        return pl.BlockSpec(shape, lambda g: (0,) * len(shape),
                            pipeline_mode=pl.Buffered(1))

    in_specs = [
        pl.BlockSpec((bt, 1, 1), lambda g: (g, 0, 0)),      # mask
        act_spec(n_obj_p, obj_dim_p),                       # i
        act_spec(n_sem_p, sem_dim_p),                       # s
        w_spec((obj_dim_p, e_is8)), w_spec((1, e_is8)),     # wim, bim
        w_spec((sem_dim_p, wf_w)), w_spec((1, wf_w)),       # fused W, b
        w_spec((e_is8, sem_dim_p)), w_spec((e_is8, sem_dim_p)), w_spec((1, sem_dim_p)),
        w_spec((sem_dim_p, sem_dim_p)),                     # wsb
    ]

    grid_spec = pltpu.PrefetchScalarGridSpec(
        num_scalar_prefetch=0,
        grid=(num_steps,),
        in_specs=in_specs,
        out_specs=act_spec(n_sem_p, sem_dim_p),
    )

    # ---- cost estimate (advisory) and VMEM budget ---------------------------
    macs = (bp * n_obj_p * obj_dim_p * e_is8
            + bp * n_sem_p * sem_dim_p * wf_w
            + 2 * bp * n_sem_p * n_obj_p * e_is8
            + bp * n_sem_p * n_sem_p * e_ss8
            + bp * n_sem_p * n_sem_p * sem_dim_p
            + 2 * bp * n_sem_p * e_is8 * sem_dim_p
            + bp * n_sem_p * sem_dim_p * sem_dim_p)
    in_bytes = sum(int(x.size) * x.dtype.itemsize for x in operands)
    out_bytes = bp * n_sem_p * sem_dim_p * 4
    cost = pl.CostEstimate(
        flops=2 * macs,
        transcendentals=bp * n_sem_p * (n_obj_p + n_sem_p + 2),
        bytes_accessed=in_bytes + out_bytes,
    )

    if vmem_limit_bytes is None:
        weight_bytes = sum(int(x.size) * x.dtype.itemsize for x in operands[3:])
        step_io = (bt * n_obj_p * obj_dim_p * 2 + 2 * bt * n_sem_p * sem_dim_p * 4
                   + bt * 4)
        inter = 4 * (bt * n_obj_p * e_is8
                     + bt * n_sem_p * (wf_w + n_obj_p + n_sem_p + 4 * sem_dim_p + 2 * e_is8))
        est = weight_bytes + 2 * step_io + 2 * inter
        if est > 24 * 2 ** 20:
            vmem_limit_bytes = int(min(max(est * 5 // 4, 32 * 2 ** 20), 64 * 2 ** 20))

    kernel = functools.partial(_sga_kernel, bt=bt, n_obj_valid=n_obj,
                               e_is8=e_is8, e_ss8=e_ss8, nb_p=nb_p)

    out_p = pl.pallas_call(
        kernel,
        out_shape=jax.ShapeDtypeStruct((bp, n_sem_p, sem_dim_p), f32),
        grid_spec=grid_spec,
        compiler_params=pltpu.CompilerParams(
            dimension_semantics=("parallel",),
            vmem_limit_bytes=vmem_limit_bytes,
        ),
        cost_estimate=cost,
    )(*operands)

    return out_p[:B, :n_sem, :sem_dim]


def reference(i, s, mask_s, params, compute_dtype=jnp.float32):
    """Pure-JAX forward matching the PyTorch module exactly when
    compute_dtype=float32; with bfloat16 it mimics the kernel's mixed
    precision (bf16 matmul operands, f32 accumulation)."""
    f32 = jnp.float32
    cd = compute_dtype
    relu = jax.nn.relu

    def mm(a, b):
        return jnp.einsum("...ij,jk->...ik", a.astype(cd), b.astype(cd),
                          preferred_element_type=f32)

    def bmm(a, b, eq):
        return jnp.einsum(eq, a.astype(cd), b.astype(cd), preferred_element_type=f32)

    i_proj = relu(mm(i, params["wim"]) + params["bim"])
    s_proj = relu(mm(s, params["wsm"]) + params["bsm"])
    sim = bmm(s_proj, i_proj, "bqe,bke->bqk")
    att = jax.nn.softmax(sim, axis=2)
    i_att = bmm(att, i_proj, "bqk,bke->bqe")
    h_is = relu(mm(jnp.concatenate([s_proj, i_att], axis=2), params["wc"]) + params["bc"])

    s1 = relu(mm(s, params["w1"]) + params["b1"])
    s2 = relu(mm(s, params["w2"]) + params["b2"])
    sim2 = bmm(s1, s2, "bqe,bke->bqk")
    col = jnp.arange(sim2.shape[2])[None, None, :]
    valid = col < mask_s[:, None, None]
    sim2 = jnp.where(valid, sim2, -jnp.inf)
    att2 = jax.nn.softmax(sim2, axis=2)
    i_att2 = bmm(att2, s, "bqk,bkd->bqd")
    h_ss = relu(mm(jnp.concatenate([s, i_att2], axis=2), params["ws"]) + params["bs"])
    return s.astype(f32) + h_is + h_ss


def init_params(key, obj_dim, sem_dim, e_is, e_ss):
    ks = jax.random.split(key, 12)
    scale = 0.05
    return {
        "wim": scale * jax.random.normal(ks[0], (obj_dim, e_is), jnp.float32),
        "bim": scale * jax.random.normal(ks[1], (1, e_is), jnp.float32),
        "wsm": scale * jax.random.normal(ks[2], (sem_dim, e_is), jnp.float32),
        "bsm": scale * jax.random.normal(ks[3], (1, e_is), jnp.float32),
        "wc":  scale * jax.random.normal(ks[4], (2 * e_is, sem_dim), jnp.float32),
        "bc":  scale * jax.random.normal(ks[5], (1, sem_dim), jnp.float32),
        "w1":  scale * jax.random.normal(ks[6], (sem_dim, e_ss), jnp.float32),
        "b1":  scale * jax.random.normal(ks[7], (1, e_ss), jnp.float32),
        "w2":  scale * jax.random.normal(ks[8], (sem_dim, e_ss), jnp.float32),
        "b2":  scale * jax.random.normal(ks[9], (1, e_ss), jnp.float32),
        "ws":  scale * jax.random.normal(ks[10], (2 * sem_dim, sem_dim), jnp.float32),
        "bs":  scale * jax.random.normal(ks[11], (1, sem_dim), jnp.float32),
    }


if __name__ == "__main__":
    # Small, deliberately unaligned shapes to exercise the padding path
    # (original module: N_obj=100, obj_dim=2048, N_sem=50, sem_dim=300).
    B, N_OBJ, OBJ_DIM = 2, 20, 96
    N_SEM, SEM_DIM = 10, 48
    E_IS, E_SS = 40, 40

    key = jax.random.PRNGKey(0)
    k_i, k_s, k_p = jax.random.split(key, 3)
    i = jax.random.normal(k_i, (B, N_OBJ, OBJ_DIM), jnp.float32)
    s = jax.random.normal(k_s, (B, N_SEM, SEM_DIM), jnp.float32)
    mask_s = jnp.array([5, 8], dtype=jnp.int32)   # valid semantic tokens per batch
    params = init_params(k_p, OBJ_DIM, SEM_DIM, E_IS, E_SS)

    out = jax.block_until_ready(semantic_graph_aggregator(i, s, mask_s, params))
    assert out.shape == (B, N_SEM, SEM_DIM)

    # Matched-precision reference (same bf16 quantization points as the kernel).
    ref_bf16 = jax.block_until_ready(reference(i, s, mask_s, params, jnp.bfloat16))
    # Full-precision reference (exact PyTorch semantics) — loose sanity check.
    ref_f32 = jax.block_until_ready(reference(i, s, mask_s, params, jnp.float32))

    err_matched = float(jnp.max(jnp.abs(out - ref_bf16)))
    err_exact = float(jnp.max(jnp.abs(out - ref_f32)))
    assert jnp.allclose(out, ref_bf16, atol=2e-2, rtol=2e-2), err_matched
    assert jnp.allclose(out, ref_f32, atol=1.5e-1, rtol=1.5e-1), err_exact

    print("KERNEL_OK")
</pallas_src>

<mosaic_0001>
module attributes {stable_mosaic.version = 11 : i64} {
  func.func @_sga_kernel(%arg0: i32, %arg1: memref<1x1x1xi32, #tpu.memory_space<vmem>>, %arg2: memref<1x128x128xbf16, #tpu.memory_space<vmem>>, %arg3: memref<1x16x128xf32, #tpu.memory_space<vmem>>, %arg4: memref<128x40xbf16, #tpu.memory_space<vmem>>, %arg5: memref<1x40xf32, #tpu.memory_space<vmem>>, %arg6: memref<128x256xbf16, #tpu.memory_space<vmem>>, %arg7: memref<1x256xf32, #tpu.memory_space<vmem>>, %arg8: memref<40x128xbf16, #tpu.memory_space<vmem>>, %arg9: memref<40x128xbf16, #tpu.memory_space<vmem>>, %arg10: memref<1x128xf32, #tpu.memory_space<vmem>>, %arg11: memref<128x128xbf16, #tpu.memory_space<vmem>>, %arg12: memref<1x16x128xf32, #tpu.memory_space<vmem>>) attributes {dimension_semantics = [#tpu.dimension_semantics<parallel>], iteration_bounds = array<i64: 2>, scalar_prefetch = 0 : i64, scratch_operands = 0 : i64, tpu.core_type = #tpu.core_type<tc>, window_params = [{transform_indices = @transform_0, window_bounds = array<i64: 1, 1, 1>}, {transform_indices = @transform_1, window_bounds = array<i64: 1, 128, 128>}, {transform_indices = @transform_2, window_bounds = array<i64: 1, 16, 128>}, {pipeline_mode = #tpu.pipeline_mode<synchronous>, transform_indices = @transform_3, window_bounds = array<i64: 128, 40>}, {pipeline_mode = #tpu.pipeline_mode<synchronous>, transform_indices = @transform_4, window_bounds = array<i64: 1, 40>}, {pipeline_mode = #tpu.pipeline_mode<synchronous>, transform_indices = @transform_5, window_bounds = array<i64: 128, 256>}, {pipeline_mode = #tpu.pipeline_mode<synchronous>, transform_indices = @transform_6, window_bounds = array<i64: 1, 256>}, {pipeline_mode = #tpu.pipeline_mode<synchronous>, transform_indices = @transform_7, window_bounds = array<i64: 40, 128>}, {pipeline_mode = #tpu.pipeline_mode<synchronous>, transform_indices = @transform_8, window_bounds = array<i64: 40, 128>}, {pipeline_mode = #tpu.pipeline_mode<synchronous>, transform_indices = @transform_9, window_bounds = array<i64: 1, 128>}, {pipeline_mode = #tpu.pipeline_mode<synchronous>, transform_indices = @transform_10, window_bounds = array<i64: 128, 128>}, {transform_indices = @transform_11, window_bounds = array<i64: 1, 16, 128>}]} {
    %c0 = arith.constant 0 : index
    %c0_0 = arith.constant 0 : index
    %c0_1 = arith.constant 0 : index
    %0 = vector.load %arg2[%c0, %c0_0, %c0_1] : memref<1x128x128xbf16, #tpu.memory_space<vmem>>, vector<1x128x128xbf16>
    %1 = vector.shape_cast %0 : vector<1x128x128xbf16> to vector<128x128xbf16>
    %c0_2 = arith.constant 0 : index
    %c0_3 = arith.constant 0 : index
    %c0_4 = arith.constant 0 : index
    %2 = vector.load %arg3[%c0_2, %c0_3, %c0_4] : memref<1x16x128xf32, #tpu.memory_space<vmem>>, vector<1x16x128xf32>
    %3 = vector.shape_cast %2 : vector<1x16x128xf32> to vector<16x128xf32>
    %4 = arith.truncf %3 : vector<16x128xf32> to vector<16x128xbf16>
    %c0_5 = arith.constant 0 : index
    %c0_6 = arith.constant 0 : index
    %5 = vector.load %arg4[%c0_5, %c0_6] : memref<128x40xbf16, #tpu.memory_space<vmem>>, vector<128x40xbf16>
    %cst = arith.constant dense<0.000000e+00> : vector<128x40xf32>
    %6 = tpu.matmul %1, %5, %cst {dimension_numbers = #tpu.dot_dimension_numbers<[1], [0], [0], [1], [0, 0, 1, 1], [], []>} : vector<128x128xbf16>, vector<128x40xbf16>, vector<128x40xf32> -> vector<128x40xf32>
    %c0_7 = arith.constant 0 : index
    %c0_8 = arith.constant 0 : index
    %7 = vector.load %arg5[%c0_7, %c0_8] : memref<1x40xf32, #tpu.memory_space<vmem>>, vector<1x40xf32>
    %8 = vector.broadcast %7 : vector<1x40xf32> to vector<128x40xf32>
    %9 = arith.addf %6, %8 : vector<128x40xf32>
    %cst_9 = arith.constant 0.000000e+00 : f32
    %10 = vector.broadcast %cst_9 : f32 to vector<128x40xf32>
    %11 = arith.maximumf %9, %10 : vector<128x40xf32>
    %12 = arith.truncf %11 : vector<128x40xf32> to vector<128x40xbf16>
    %13 = vector.shape_cast %12 : vector<128x40xbf16> to vector<1x128x40xbf16>
    %c0_10 = arith.constant 0 : index
    %c0_11 = arith.constant 0 : index
    %14 = vector.load %arg6[%c0_10, %c0_11] : memref<128x256xbf16, #tpu.memory_space<vmem>>, vector<128x256xbf16>
    %cst_12 = arith.constant dense<0.000000e+00> : vector<16x256xf32>
    %15 = tpu.matmul %4, %14, %cst_12 {dimension_numbers = #tpu.dot_dimension_numbers<[1], [0], [0], [1], [0, 0, 1, 1], [], []>} : vector<16x128xbf16>, vector<128x256xbf16>, vector<16x256xf32> -> vector<16x256xf32>
    %c0_13 = arith.constant 0 : index
    %c0_14 = arith.constant 0 : index
    %16 = vector.load %arg7[%c0_13, %c0_14] : memref<1x256xf32, #tpu.memory_space<vmem>>, vector<1x256xf32>
    %17 = vector.broadcast %16 : vector<1x256xf32> to vector<16x256xf32>
    %18 = arith.addf %15, %17 : vector<16x256xf32>
    %19 = vector.extract_strided_slice %18 {offsets = [0, 0], sizes = [16, 40], strides = [1, 1]} : vector<16x256xf32> to vector<16x40xf32>
    %cst_15 = arith.constant 0.000000e+00 : f32
    %20 = vector.broadcast %cst_15 : f32 to vector<16x40xf32>
    %21 = arith.maximumf %19, %20 : vector<16x40xf32>
    %22 = vector.extract_strided_slice %18 {offsets = [0, 40], sizes = [16, 40], strides = [1, 1]} : vector<16x256xf32> to vector<16x40xf32>
    %cst_16 = arith.constant 0.000000e+00 : f32
    %23 = vector.broadcast %cst_16 : f32 to vector<16x40xf32>
    %24 = arith.maximumf %22, %23 : vector<16x40xf32>
    %25 = vector.extract_strided_slice %18 {offsets = [0, 80], sizes = [16, 40], strides = [1, 1]} : vector<16x256xf32> to vector<16x40xf32>
    %cst_17 = arith.constant 0.000000e+00 : f32
    %26 = vector.broadcast %cst_17 : f32 to vector<16x40xf32>
    %27 = arith.maximumf %25, %26 : vector<16x40xf32>
    %28 = vector.extract_strided_slice %18 {offsets = [0, 128], sizes = [16, 128], strides = [1, 1]} : vector<16x256xf32> to vector<16x128xf32>
    %29 = arith.truncf %21 : vector<16x40xf32> to vector<16x40xbf16>
    %30 = vector.shape_cast %29 : vector<16x40xbf16> to vector<1x16x40xbf16>
    %31 = arith.truncf %24 : vector<16x40xf32> to vector<16x40xbf16>
    %32 = vector.shape_cast %31 : vector<16x40xbf16> to vector<1x16x40xbf16>
    %33 = arith.truncf %27 : vector<16x40xf32> to vector<16x40xbf16>
    %34 = vector.shape_cast %33 : vector<16x40xbf16> to vector<1x16x40xbf16>
    %35 = vector.shape_cast %4 : vector<16x128xbf16> to vector<1x16x128xbf16>
    %cst_18 = arith.constant dense<0.000000e+00> : vector<1x16x128xf32>
    %36 = tpu.matmul %30, %13, %cst_18 {dimension_numbers = #tpu.dot_dimension_numbers<[2], [2], [1], [1], [0, 0, 0, 1, 1, 1], [0], [0]>} : vector<1x16x40xbf16>, vector<1x128x40xbf16>, vector<1x16x128xf32> -> vector<1x16x128xf32>
    %37 = tpu.iota {dimensions = array<i32: 2>} : vector<1x16x128xi32>
    %c20_i32 = arith.constant 20 : i32
    %38 = vector.broadcast %c20_i32 : i32 to vector<1x16x128xi32>
    %39 = arith.cmpi slt, %37, %38 : vector<1x16x128xi32>
    %cst_19 = arith.constant -1.000000e+30 : f32
    %40 = vector.broadcast %cst_19 : f32 to vector<1x16x128xf32>
    %41 = arith.select %39, %36, %40 : vector<1x16x128xi1>, vector<1x16x128xf32>
    %cst_20 = arith.constant dense<0xFF800000> : vector<1x16xf32>
    %42 = vector.multi_reduction <maximumf>, %41, %cst_20 [2] : vector<1x16x128xf32> to vector<1x16xf32>
    %43 = vector.shape_cast %42 : vector<1x16xf32> to vector<1x16x1xf32>
    %44 = vector.broadcast %43 : vector<1x16x1xf32> to vector<1x16x128xf32>
    %45 = arith.subf %41, %44 : vector<1x16x128xf32>
    %46 = math.exp %45 : vector<1x16x128xf32>
    %cst_21 = arith.constant dense<0.000000e+00> : vector<1x16xf32>
    %47 = vector.multi_reduction <add>, %46, %cst_21 [2] : vector<1x16x128xf32> to vector<1x16xf32>
    %48 = vector.shape_cast %47 : vector<1x16xf32> to vector<1x16x1xf32>
    %49 = tpu.reciprocal %48 {approx = true} : vector<1x16x1xf32> -> vector<1x16x1xf32>
    %50 = vector.broadcast %49 : vector<1x16x1xf32> to vector<1x16x128xf32>
    %51 = arith.mulf %46, %50 : vector<1x16x128xf32>
    %52 = arith.truncf %51 : vector<1x16x128xf32> to vector<1x16x128xbf16>
    %cst_22 = arith.constant dense<0.000000e+00> : vector<1x16x40xf32>
    %53 = tpu.matmul %52, %13, %cst_22 {dimension_numbers = #tpu.dot_dimension_numbers<[2], [1], [1], [2], [0, 0, 0, 1, 1, 2], [0], [0]>} : vector<1x16x128xbf16>, vector<1x128x40xbf16>, vector<1x16x40xf32> -> vector<1x16x40xf32>
    %cst_23 = arith.constant dense<0.000000e+00> : vector<1x16x16xf32>
    %54 = tpu.matmul %32, %34, %cst_23 {dimension_numbers = #tpu.dot_dimension_numbers<[2], [2], [1], [1], [0, 0, 0, 1, 1, 1], [0], [0]>} : vector<1x16x40xbf16>, vector<1x16x40xbf16>, vector<1x16x16xf32> -> vector<1x16x16xf32>
    %c0_24 = arith.constant 0 : index
    %c0_25 = arith.constant 0 : index
    %c0_26 = arith.constant 0 : index
    %55 = vector.load %arg1[%c0_24, %c0_25, %c0_26] : memref<1x1x1xi32, #tpu.memory_space<vmem>>, vector<1x1x1xi32>
    %56 = tpu.iota {dimensions = array<i32: 2>} : vector<1x16x16xi32>
    %57 = vector.broadcast %55 : vector<1x1x1xi32> to vector<1x16x16xi32>
    %58 = arith.cmpi slt, %56, %57 : vector<1x16x16xi32>
    %cst_27 = arith.constant -1.000000e+30 : f32
    %59 = vector.broadcast %cst_27 : f32 to vector<1x16x16xf32>
    %60 = arith.select %58, %54, %59 : vector<1x16x16xi1>, vector<1x16x16xf32>
    %cst_28 = arith.constant dense<0xFF800000> : vector<1x16xf32>
    %61 = vector.multi_reduction <maximumf>, %60, %cst_28 [2] : vector<1x16x16xf32> to vector<1x16xf32>
    %62 = vector.shape_cast %61 : vector<1x16xf32> to vector<1x16x1xf32>
    %63 = vector.broadcast %62 : vector<1x16x1xf32> to vector<1x16x16xf32>
    %64 = arith.subf %60, %63 : vector<1x16x16xf32>
    %65 = math.exp %64 : vector<1x16x16xf32>
    %cst_29 = arith.constant dense<0.000000e+00> : vector<1x16xf32>
    %66 = vector.multi_reduction <add>, %65, %cst_29 [2] : vector<1x16x16xf32> to vector<1x16xf32>
    %67 = vector.shape_cast %66 : vector<1x16xf32> to vector<1x16x1xf32>
    %68 = tpu.reciprocal %67 {approx = true} : vector<1x16x1xf32> -> vector<1x16x1xf32>
    %69 = vector.broadcast %68 : vector<1x16x1xf32> to vector<1x16x16xf32>
    %70 = arith.mulf %65, %69 : vector<1x16x16xf32>
    %71 = arith.truncf %70 : vector<1x16x16xf32> to vector<1x16x16xbf16>
    %cst_30 = arith.constant dense<0.000000e+00> : vector<1x16x128xf32>
    %72 = tpu.matmul %71, %35, %cst_30 {dimension_numbers = #tpu.dot_dimension_numbers<[2], [1], [1], [2], [0, 0, 0, 1, 1, 2], [0], [0]>} : vector<1x16x16xbf16>, vector<1x16x128xbf16>, vector<1x16x128xf32> -> vector<1x16x128xf32>
    %73 = arith.truncf %53 : vector<1x16x40xf32> to vector<1x16x40xbf16>
    %74 = vector.shape_cast %73 : vector<1x16x40xbf16> to vector<16x40xbf16>
    %c0_31 = arith.constant 0 : index
    %c0_32 = arith.constant 0 : index
    %75 = vector.load %arg8[%c0_31, %c0_32] : memref<40x128xbf16, #tpu.memory_space<vmem>>, vector<40x128xbf16>
    %cst_33 = arith.constant dense<0.000000e+00> : vector<16x128xf32>
    %76 = tpu.matmul %29, %75, %cst_33 {dimension_numbers = #tpu.dot_dimension_numbers<[1], [0], [0], [1], [0, 0, 1, 1], [], []>} : vector<16x40xbf16>, vector<40x128xbf16>, vector<16x128xf32> -> vector<16x128xf32>
    %c0_34 = arith.constant 0 : index
    %c0_35 = arith.constant 0 : index
    %77 = vector.load %arg9[%c0_34, %c0_35] : memref<40x128xbf16, #tpu.memory_space<vmem>>, vector<40x128xbf16>
    %cst_36 = arith.constant dense<0.000000e+00> : vector<16x128xf32>
    %78 = tpu.matmul %74, %77, %cst_36 {dimension_numbers = #tpu.dot_dimension_numbers<[1], [0], [0], [1], [0, 0, 1, 1], [], []>} : vector<16x40xbf16>, vector<40x128xbf16>, vector<16x128xf32> -> vector<16x128xf32>
    %79 = arith.addf %76, %78 : vector<16x128xf32>
    %c0_37 = arith.constant 0 : index
    %c0_38 = arith.constant 0 : index
    %80 = vector.load %arg10[%c0_37, %c0_38] : memref<1x128xf32, #tpu.memory_space<vmem>>, vector<1x128xf32>
    %81 = vector.broadcast %80 : vector<1x128xf32> to vector<16x128xf32>
    %82 = arith.addf %79, %81 : vector<16x128xf32>
    %cst_39 = arith.constant 0.000000e+00 : f32
    %83 = vector.broadcast %cst_39 : f32 to vector<16x128xf32>
    %84 = arith.maximumf %82, %83 : vector<16x128xf32>
    %85 = arith.truncf %72 : vector<1x16x128xf32> to vector<1x16x128xbf16>
    %86 = vector.shape_cast %85 : vector<1x16x128xbf16> to vector<16x128xbf16>
    %c0_40 = arith.constant 0 : index
    %c0_41 = arith.constant 0 : index
    %87 = vector.load %arg11[%c0_40, %c0_41] : memref<128x128xbf16, #tpu.memory_space<vmem>>, vector<128x128xbf16>
    %cst_42 = arith.constant dense<0.000000e+00> : vector<16x128xf32>
    %88 = tpu.matmul %86, %87, %cst_42 {dimension_numbers = #tpu.dot_dimension_numbers<[1], [0], [0], [1], [0, 0, 1, 1], [], []>} : vector<16x128xbf16>, vector<128x128xbf16>, vector<16x128xf32> -> vector<16x128xf32>
    %89 = arith.addf %28, %88 : vector<16x128xf32>
    %cst_43 = arith.constant 0.000000e+00 : f32
    %90 = vector.broadcast %cst_43 : f32 to vector<16x128xf32>
    %91 = arith.maximumf %89, %90 : vector<16x128xf32>
    %92 = arith.addf %3, %84 : vector<16x128xf32>
    %93 = arith.addf %92, %91 : vector<16x128xf32>
    %94 = vector.shape_cast %93 : vector<16x128xf32> to vector<1x16x128xf32>
    %c0_44 = arith.constant 0 : index
    %c0_45 = arith.constant 0 : index
    %c0_46 = arith.constant 0 : index
    %95 = vector.load %arg12[%c0_44, %c0_45, %c0_46] : memref<1x16x128xf32, #tpu.memory_space<vmem>>, vector<1x16x128xf32>
    tpu.vector_store %arg12[%c0_44, %c0_45, %c0_46], %94 {strides = array<i32>} : memref<1x16x128xf32, #tpu.memory_space<vmem>>, vector<1x16x128xf32>,
    return
  }
  func.func @transform_0(%arg0: i32) -> (i32, i32, i32) {
    %c0_i32 = arith.constant 0 : i32
    %c0_i32_0 = arith.constant 0 : i32
    %c0_i32_1 = arith.constant 0 : i32
    return %arg0, %c0_i32, %c0_i32_0 : i32, i32, i32
  }
  func.func @transform_1(%arg0: i32) -> (i32, i32, i32) {
    %c0_i32 = arith.constant 0 : i32
    %c0_i32_0 = arith.constant 0 : i32
    %c0_i32_1 = arith.constant 0 : i32
    return %arg0, %c0_i32, %c0_i32_0 : i32, i32, i32
  }
  func.func @transform_2(%arg0: i32) -> (i32, i32, i32) {
    %c0_i32 = arith.constant 0 : i32
    %c0_i32_0 = arith.constant 0 : i32
    %c0_i32_1 = arith.constant 0 : i32
    return %arg0, %c0_i32, %c0_i32_0 : i32, i32, i32
  }
  func.func @transform_3(%arg0: i32) -> (i32, i32) {
    %c0_i32 = arith.constant 0 : i32
    %c0_i32_0 = arith.constant 0 : i32
    %c0_i32_1 = arith.constant 0 : i32
    return %c0_i32, %c0_i32_0 : i32, i32
  }
  func.func @transform_4(%arg0: i32) -> (i32, i32) {
    %c0_i32 = arith.constant 0 : i32
    %c0_i32_0 = arith.constant 0 : i32
    %c0_i32_1 = arith.constant 0 : i32
    return %c0_i32, %c0_i32_0 : i32, i32
  }
  func.func @transform_5(%arg0: i32) -> (i32, i32) {
    %c0_i32 = arith.constant 0 : i32
    %c0_i32_0 = arith.constant 0 : i32
    %c0_i32_1 = arith.constant 0 : i32
    return %c0_i32, %c0_i32_0 : i32, i32
  }
  func.func @transform_6(%arg0: i32) -> (i32, i32) {
    %c0_i32 = arith.constant 0 : i32
    %c0_i32_0 = arith.constant 0 : i32
    %c0_i32_1 = arith.constant 0 : i32
    return %c0_i32, %c0_i32_0 : i32, i32
  }
  func.func @transform_7(%arg0: i32) -> (i32, i32) {
    %c0_i32 = arith.constant 0 : i32
    %c0_i32_0 = arith.constant 0 : i32
    %c0_i32_1 = arith.constant 0 : i32
    return %c0_i32, %c0_i32_0 : i32, i32
  }
  func.func @transform_8(%arg0: i32) -> (i32, i32) {
    %c0_i32 = arith.constant 0 : i32
    %c0_i32_0 = arith.constant 0 : i32
    %c0_i32_1 = arith.constant 0 : i32
    return %c0_i32, %c0_i32_0 : i32, i32
  }
  func.func @transform_9(%arg0: i32) -> (i32, i32) {
    %c0_i32 = arith.constant 0 : i32
    %c0_i32_0 = arith.constant 0 : i32
    %c0_i32_1 = arith.constant 0 : i32
    return %c0_i32, %c0_i32_0 : i32, i32
  }
  func.func @transform_10(%arg0: i32) -> (i32, i32) {
    %c0_i32 = arith.constant 0 : i32
    %c0_i32_0 = arith.constant 0 : i32
    %c0_i32_1 = arith.constant 0 : i32
    return %c0_i32, %c0_i32_0 : i32, i32
  }
  func.func @transform_11(%arg0: i32) -> (i32, i32, i32) {
    %c0_i32 = arith.constant 0 : i32
    %c0_i32_0 = arith.constant 0 : i32
    %c0_i32_1 = arith.constant 0 : i32
    return %arg0, %c0_i32, %c0_i32_0 : i32, i32, i32
  }
}

</mosaic_0001>

<bundles_post_ra>
// kernel: tpu_custom_call.1
= control target key start
LH: loop header
LB: loop body
LE: loop exit
PB: predicated region body
PF: predicated region fallthrough
CT: control target
= control target key end

     0   :  { %s2623_s0 = inlined_call_operand.vmem [shape: s32[2,1,1], index: 0, kind: input, shape index: {}]   ;;  %s2624_s1 = inlined_call_operand.hbm [shape: bf16[2,128,128], index: 1, kind: input, shape index: {}]   ;;  %s2625_s2 = inlined_call_operand.vmem [shape: f32[2,16,128], index: 2, kind: input, shape index: {}]   ;;  %s2626_s3 = inlined_call_operand.vmem [shape: bf16[128,40], index: 3, kind: input, shape index: {}]   ;;  %s2627_s4 = inlined_call_operand.vmem [shape: f32[1,40], index: 4, kind: input, shape index: {}]   ;;  %s2628_s5 = inlined_call_operand.hbm [shape: bf16[128,256], index: 5, kind: input, shape index: {}]   ;;  %s2629_s6 = inlined_call_operand.vmem [shape: f32[1,256], index: 6, kind: input, shape index: {}]   ;;  %s2630_s7 = inlined_call_operand.vmem [shape: bf16[40,128], index: 7, kind: input, shape index: {}]   ;;  %s2631_s8 = inlined_call_operand.hbm [shape: bf16[40,128], index: 8, kind: input, shape index: {}]   ;;  %s2632_s9 = inlined_call_operand.vmem [shape: f32[1,128], index: 9, kind: input, shape index: {}]   ;;  %s2633_s10 = inlined_call_operand.vmem [shape: bf16[128,128], index: 10, kind: input, shape index: {}]   ;;  %s2634_s11 = inlined_call_operand.hbm [shape: f32[2,16,128], index: 11, kind: output, shape index: {}]  }
   0x1   :  { %2643 = sst [smem:[#allocation14_spill]] %s2634_s11 }
   0x2   :  { %16 = vsyncpa [#allocation3], 0 }
   0x3   :  { %18 = vsyncpa [#allocation3 + $0x1], 0 }
   0x4   :  { %19 = vsyncpa [#allocation6], 0 }
   0x5   :  { %20 = vsyncpa [#allocation4], 0 }
   0x6   :  { %22 = vsyncpa [#allocation4 + $0x1], 0  ;;  %s2173_s17 = smov 0   ;;  %s2175_s18 = smov 0  }
   0x7   :  { %s2177_s19 = smov 0   ;;  %s2179_s20 = smov 0  }
   0x8 LB: > { %2644 = sst [smem:[#allocation12_spill]] %s2084_s17  ;;  %s2194_s21 = sadd.s32 4294967295, %s2096_s20   ;;  %s2096_s20 = sphi %s2179_s20, %s2667_s20   ;;  %s2092_s19 = sphi %s2177_s19, %s2666_s19   ;;  %s2088_s18 = sphi %s2175_s18, %s2665_s18   ;;  %s2084_s17 = sphi %s2173_s17, %s2664_s17  }
   0x9   : > { %s1534_s22 = sadd.s32 4294967294, %s2096_s20   ;;  %p74_p0 = scmp.ne.s32.totalorder %s2088_s18, %s2084_s17 }
   0xa   : > { %p2635_p1 = scmp.eq.s32.totalorder %s2194_s21, 0  ;;  %p298_p3 = scmp.eq.s32.totalorder %s1534_s22, 1 }
   0xb   : > { %p1535_p5 = scmp.ge.s32.totalorder %s2096_s20, 1  ;;  %p305_p7 = scmp.lt.s32.totalorder %s2096_s20, 3 }
   0xc   : > { %p2203_p4 = por %p2635_p1, %p74_p0  ;;  %p2208_p6 = por %p298_p3, %p74_p0 }
   0xd   : > { %p2213_p8 = pnand %p1535_p5, %p305_p7  ;;  %s2098_s26 = smov [#allocation5]  }
   0xe   : > { %s2645_s23 = scalar_select %p2203_p4, 1, 0 }
   0xf   : > { %s2646_s24 = scalar_select %p2208_p6, 1, 0 }
  0x10   : > { %s323_s27 = sshll.u32 %s2098_s26, 4  ;;  %p1802_p9 = pneg %p2213_p8  ;;  %s2217_s27 = int_to_ptr.vmem [resolvable:$true] %s323_s27 }
  0x11   : > { %2647 = sst [smem:[#allocation13_spill]] %s2646_s24  ;;  %s2099_s29 = smov [#allocation7]  }
  0x12   : > { %p2224_p11 = pnand %p1802_p9, %p2635_p1  ;;  %s342_s30 = sshll.u32 %s2099_s29, 4  ;;  %s2228_s30 = int_to_ptr.vmem [resolvable:$true] %s342_s30 }
  0x13   : > { %s1940_s14 = scalar_lea.hbm %s2628_s5, 2048 }
  0x14   : > { %p1941_p12 = scmp.ne.s32.totalorder %s2628_s5, %s1940_s14  ;;  %p1942_p13 = pneg %p2224_p11 }
  0x15   : > { %p1947_p5 = scmp.lt.u32.totalorder %s1940_s14, %s2628_s5 }
  0x16   : > { %p1943_p0 = pnand %p1942_p13, %p1941_p12 }
  0x18   : > { %p1944_p3 = pneg %p1943_p0 }
  0x1a   : > { %p1949_p7 = pnand %p1947_p5, %p1944_p3 }
  0x1c   : > { %1952 = shalt.err (!%p1949_p7)
}
  0x1d   : > { %s1953_s29 = scalar_lea.vmem %s2217_s27, 2048  ;;  %p1961_p2 = scmp.lt.s32.totalorder %s2217_s27, %s2217_s27 }
  0x1e   : > { %p1954_p9 = scmp.ne.s32.totalorder %s2217_s27, %s1953_s29  ;;  %p1962_p12 = scmp.lt.s32.totalorder %s1953_s29, %s1953_s29 }
  0x20   : > { %p1956_p10 = pnand %p1954_p9, %p1942_p13  ;;  %p1963_p0 = por %p1962_p12, %p1961_p2 }
  0x22   : > { %p1957_p1 = pneg %p1956_p10 }
  0x24   : > { %p1964_p6 = pnand %p1963_p0, %p1957_p1 }
  0x26   : > { %1967 = shalt.err (!%p1964_p6)
}
  0x27   : > { %s2100_s12 = smov 128   ;;  %s2101_s13 = smov 8  }
  0x28   : > { %1805 = dma.hbm_to_vmem [thread:$0]  (!%p2224_p11), %s2628_s5, 2048, %s2217_s27, [#allocation6], %s2100_s12, %s2100_s12, %s2101_s13  }
  0x29   : > { %s1968_s26 = scalar_lea.hbm %s2631_s8, 320 }
  0x2a   : > { %p1969_p2 = scmp.ne.s32.totalorder %s2631_s8, %s1968_s26  ;;  %p1975_p10 = scmp.lt.u32.totalorder %s1968_s26, %s2631_s8 }
  0x2c   : > { %p1971_p1 = pnand %p1969_p2, %p1942_p13 }
  0x2e   : > { %p1972_p6 = pneg %p1971_p1 }
  0x30   : > { %p1977_p3 = pnand %p1975_p10, %p1972_p6 }
  0x32   : > { %1980 = shalt.err (!%p1977_p3)
}
  0x33   : > { %s1981_s27 = scalar_lea.vmem %s2228_s30, 320  ;;  %p1989_p12 = scmp.lt.s32.totalorder %s2228_s30, %s2228_s30 }
  0x34   : > { %p1982_p5 = scmp.ne.s32.totalorder %s2228_s30, %s1981_s27  ;;  %p1990_p0 = scmp.lt.s32.totalorder %s1981_s27, %s1981_s27 }
  0x36   : > { %p1984_p7 = pnand %p1982_p5, %p1942_p13  ;;  %p1991_p2 = por %p1990_p0, %p1989_p12 }
  0x38   : > { %p1985_p9 = pneg %p1984_p7 }
  0x3a   : > { %p1992_p1 = pnand %p1991_p2, %p1985_p9 }
  0x3c   : > { %1995 = shalt.err (!%p1992_p1)
}
  0x3d   : > { %s2639_s11 = smov 64   ;;  %s2640_s17 = smov 4  }
  0x3e   : > { %1808 = dma.hbm_to_vmem [thread:$0]  (!%p2224_p11), %s2631_s8, 320, %s2228_s30, [#allocation6], %s2639_s11, %s2639_s11, %s2640_s17  }
  0x3f   : > { %s2286_s13 = sadd.s32 1, %s2096_s20   ;;  %s61_s15 = sadd.s32 1, %s2092_s19 }
  0x40   : > { %s58_s14 = ssub.s32 %s2096_s20, %s2286_s13  ;;  %p68_p6 = scmp.ne.s32.totalorder %s2092_s19, %s2088_s18 }
  0x41   : > { %p59_p13 = scmp.eq.s32.totalorder %s58_s14, 0  ;;  %p69_p10 = scmp.eq.s32.totalorder %s2096_s20, 0 }
  0x42   : > { %p2650_p5 = scmp.eq.s32.totalorder %s2194_s21, 1  ;;  %p1819_p9 = scmp.lt.s32.totalorder %s2096_s20, 2 }
  0x43   : > { %s2295_s16 = scalar_select %p59_p13, %s2092_s19, %s61_s15  }
  0x44   : > { %p70_p3 = por %p69_p10, %p68_p6  ;;  %p2299_p7 = por %p2650_p5, %p68_p6 }
  0x45   : > { %s368_s22 = sand.u32 1, %s2092_s19   ;;  %s1608_s30 = sshll.u32 %s2096_s20, 10 }
  0x46   : > { %s2651_s28 = scalar_select %p2299_p7, 1, 0 }
  0x47   : > { %s1539_s26 = sshll.u32 %s368_s22, 6  ;;  %s2309_s24 = scalar_lea.hbm %s2624_s1, %s1608_s30 }
  0x48   : > { %s372_s12 = scalar_lea.vmem [#allocation2], %s1539_s26  ;;  %p2313_p11 = pnand %p1819_p9, %p70_p3 }
  0x49   : > { %s379_s14 = sshll.u32 %s372_s12, 4  ;;  %s2317_s11 = scalar_lea.sflag [#allocation3], %s368_s22  ;;  %s2311_s14 = int_to_ptr.vmem [resolvable:$true] %s379_s14 }
  0x4a   : > { %s1996_s17 = scalar_lea.hbm %s2309_s24, 1024  ;;  %p1998_p0 = pneg %p2313_p11 }
  0x4b   : > { %p1997_p12 = scmp.ne.s32.totalorder %s2309_s24, %s1996_s17  ;;  %s2001_s29 = scalar_lea.hbm %s2624_s1, 2048 }
  0x4c   : > { %p2002_p13 = scmp.lt.u32.totalorder %s2309_s24, %s2624_s1  ;;  %p2003_p6 = scmp.lt.u32.totalorder %s2001_s29, %s1996_s17 }
  0x4d   : > { %p1999_p2 = pnand %p1998_p0, %p1997_p12  ;;  %p2005_p3 = scmp.lt.u32.totalorder %s1996_s17, %s2309_s24 }
  0x4e   : > { %p2004_p10 = por %p2003_p6, %p2002_p13 }
  0x4f   : > { %p2000_p1 = pneg %p1999_p2 }
  0x50   : > { %p2006_p5 = por %p2005_p3, %p2004_p10 }
  0x52   : > { %p2007_p9 = pnand %p2006_p5, %p2000_p1 }
  0x54   : > { %2010 = shalt.err (!%p2007_p9)
}
  0x55   : > { %s2011_s22 = scalar_lea.vmem %s2311_s14, 1024  ;;  %s2104_s26 = smov [#allocation2]  }
  0x56   : > { %p2012_p12 = scmp.ne.s32.totalorder %s2311_s14, %s2011_s22  ;;  %s2016_s30 = sshll.u32 %s2104_s26, 4  ;;  %s2017_s30 = int_to_ptr.vmem [resolvable:$false] %s2016_s30 }
  0x57   : > { %s2018_s27 = scalar_lea.vmem %s2017_s30, 2048  ;;  %p2019_p4 = scmp.lt.s32.totalorder %s2311_s14, %s2017_s30 }
  0x58   : > { %p2014_p2 = pnand %p2012_p12, %p1998_p0  ;;  %p2020_p13 = scmp.lt.s32.totalorder %s2018_s27, %s2011_s22 }
  0x5a   : > { %p2015_p7 = pneg %p2014_p2  ;;  %p2021_p6 = por %p2020_p13, %p2019_p4 }
  0x5c   : > { %p2022_p10 = pnand %p2021_p6, %p2015_p7 }
  0x5e   : > { %2025 = shalt.err (!%p2022_p10)
}
  0x5f   : > { %s2653_s17 = smov 4   ;;  %s2654_s29 = smov 64  }
  0x60   : > { %1812 = dma.hbm_to_vmem [thread:$0]  (!%p2313_p11), %s2309_s24, 1024, %s2311_s14, %s2317_s11, %s2654_s29, %s2654_s29, %s2653_s17  }
  0x61   : > { %399 = sbr.rel (%p2213_p8) target bundleno = 1950 (0x79e), region = 64  ;;  %s2351_s12 = sand.u32 (!%p2213_p8), 1, %s2088_s18  }
  0x62   : > { %s1543_s22 = sshll.u32 (!%p2213_p8), %s2351_s12, 6  ;;  %s402_s26 = scalar_lea.sflag (!%p2213_p8), [#allocation3], %s2351_s12 }
  0x63   : > { %s2355_s30 = scalar_lea.vmem (!%p2213_p8), [#allocation2], %s1543_s22  ;;  %p2655_p4 = scmp.ne.s32.totalorder (!%p2213_p8), %s2645_s23, 0 }
  0x68   : > { %2071 = dma.done.wait (%p2655_p4), %s402_s26, 1024  }
  0x69   : > { %2073 = vsyncadd (%p2655_p4), %s402_s26, 4294966272  ;;  %p2656_p7 = scmp.eq.s32.totalorder %s2194_s21, 0 }
  0x6b   : > { %2075 = dma.done.wait (%p2656_p7), [#allocation6], 2368   ;;  %p2657_p8 = pmov %p2656_p7 }
  0x6c   : > { %v2105_v0 = vmov 0   ;;  %v1870_v1 = vld [vmem:[%s2626_s3] sm:$0xff]   ;;  %v1871_v2 = vld [vmem:[%s2626_s3 + $0x8] sm:$0xff]   ;;  %v1872_v3 = vld [vmem:[%s2626_s3 + $0x10] sm:$0xff]   ;;  %p460_p11 = scmp.lt.s32.totalorder %s2194_s21, 1  ;;  %v2106_v36 = vmov 0.0   ;;  %v746_v37 = vlaneseq }
  0x6d   : > { %2077 = vsyncadd (%p2657_p8), [#allocation6], 4294964928  ;;  %868 = vmatprep.mubr.bf16.mxu1 %v2105_v0  ;;  %1868 = vset.pattern.permute.xlu1 %v2105_v0  ;;  %v1873_v4 = vld [vmem:[%s2626_s3 + $0x18] sm:$0xff]   ;;  %v1878_v5 = vld [vmem:[%s2355_s30] sm:$0xff]   ;;  %vm2107_vm0 = vmmov 0   ;;  %vm882_vm1 = vcmask 326656  }
  0x6e   : > { %1869 = vset.pattern.permute.xlu0 %v2105_v0  ;;  %1666 = vmatprep.subr.bf16.mxu0 %v1870_v1  ;;  %v1874_v6 = vld [vmem:[%s2626_s3 + $0x20] sm:$0xff]   ;;  %v1875_v9 = vld [vmem:[%s2626_s3 + $0x28] sm:$0xff]   ;;  %v1887_v10 = vld [vmem:[#allocation5 + $0x14] ss:$8 sps:$4 sm:$0xff]   ;;  %s2389_s14 = scalar_select %p460_p11, %s2194_s21, 1  ;;  %v747_v38 = vshrl.u32 %v746_v37, 7 }
  0x6f   : > { %1667 = vmatpush3.bf16.msra.mxu0 %v1870_v1  ;;  %1682 = vmatprep.mubr.bf16.mxu0 %v1878_v5  ;;  %v1884_v7 = vld [vmem:[#allocation5 + $0x4] ss:$8 sps:$4 sm:$0xff]   ;;  %v1886_v8 = vld [vmem:[#allocation5] ss:$8 sps:$4 sm:$0xff]   ;;  %v1889_v11 = vld [vmem:[#allocation5 + $0x10] ss:$8 sps:$4 sm:$0xff]  }
  0x70   : > { %1668 = vmatprep.subr.bf16.mxu0 %v1871_v2  ;;  %836 = vmatprep.subr.bf16.mxu1 %v1884_v7  ;;  %v1890_v12 = vld [vmem:[#allocation5 + $0x24] ss:$8 sps:$4 sm:$0xff]   ;;  %v1876_v13 = vld [vmem:[%s2626_s3 + $0x30] sm:$0xff]   ;;  %v1892_v14 = vld [vmem:[#allocation5 + $0x20] ss:$8 sps:$4 sm:$0xff]   ;;  %s1609_s27 = sshll.u32 %s2389_s14, 4  ;;  %s462_s17 = scalar_lea.vmem %s2623_s0, %s2389_s14 }
  0x71   : > { %837 = vmatpush1.bf16.msra.mxu1 %v1886_v8  ;;  %v1895_v15 = vld [vmem:[#allocation5 + $0x34] ss:$8 sps:$4 sm:$0xff]   ;;  %v1897_v17 = vld [vmem:[#allocation5 + $0x30] ss:$8 sps:$4 sm:$0xff]   ;;  %v1898_v18 = vld [vmem:[#allocation5 + $0x44] ss:$8 sps:$4 sm:$0xff]   ;;  %s467_s22 = scalar_lea.vmem %s2625_s2, %s1609_s27 }
  0x72   : > { %838 = vmatprep.subr.bf16.mxu1 %v1887_v10  ;;  %v1877_v16 = vld [vmem:[%s2626_s3 + $0x38] sm:$0xff]   ;;  %v1900_v19 = vld [vmem:[#allocation5 + $0x40] ss:$8 sps:$4 sm:$0xff]   ;;  %v1880_v22 = vld [vmem:[%s2355_s30 + $0x10] sm:$0xff]   ;;  %v752_v40 = vsub.s32 1, %v747_v38  ;;  %v748_v56 = vsub.s32 0, %v747_v38 }
  0x73   : > { %1669 = vmatpush3.bf16.msra.mxu0 %v1871_v2  ;;  %v1879_v20 = vld [vmem:[%s2355_s30 + $0x8] sm:$0xff]   ;;  %v1901_v21 = vld [vmem:[#allocation5 + $0x54] ss:$8 sps:$4 sm:$0xff]   ;;  %v1903_v23 = vld [vmem:[#allocation5 + $0x50] ss:$8 sps:$4 sm:$0xff]   ;;  %s2108_s24 = smov 48  }
  0x74   : > { %1670 = vmatprep.subr.bf16.mxu0 %v1872_v3  ;;  %v1904_v24 = vld [vmem:[#allocation5 + $0x64] ss:$8 sps:$4 sm:$0xff]   ;;  %v1906_v25 = vld [vmem:[#allocation5 + $0x60] ss:$8 sps:$4 sm:$0xff]   ;;  %v1881_v26 = vld [vmem:[%s2355_s30 + $0x18] sm:$0xff]   ;;  %s2109_s23 = smov 88  }
  0x75   : > { %839 = vmatpush1.bf16.msra.mxu1 %v1889_v11  ;;  %v1907_v27 = vld [vmem:[#allocation5 + $0x74] ss:$8 sps:$4 sm:$0xff]   ;;  %v1882_v28 = vld [vmem:[%s2355_s30 + $0x20] sm:$0xff]   ;;  %v1909_v29 = vld [vmem:[#allocation5 + $0x70] ss:$8 sps:$4 sm:$0xff]   ;;  %vm1079_vm4 = vcmask 130048  }
  0x76   : > { %840 = vmatprep.subr.bf16.mxu1 %v1890_v12  ;;  %v2402_v30 = vld [vmem:[%s467_s22] sm:$0xff]  ;;  %v2404_v31 = vld [vmem:[%s467_s22 + $0x8] sm:$0xff]  ;;  %v1893_v34 = vld [vmem:[%s2355_s30 + $0x30] sm:$0xff]   ;;  %vm1176_vm5 = vcmask 1043456   ;;  %s1546_s14 = sshll.u32 %s2351_s12, 4  ;;  %s1610_s26 = sshll.u32 %s2194_s21, 8 }
  0x77   : > { %1671 = vmatpush3.bf16.msra.mxu0 %v1872_v3  ;;  %v2408_v32 = vpack.c.bf16 %v2404_v31, %v2402_v30  ;;  %v1883_v33 = vld [vmem:[%s2355_s30 + $0x28] sm:$0xff]   ;;  %v1894_v35 = vld [vmem:[%s2355_s30 + $0x38] sm:$0xff]   ;;  %v744_v39 = vld [vmem:[%s2629_s6] sm:$0x3]  ;;  %s459_s29 = scalar_lea.vmem [#allocation8], %s1546_s14  ;;  %s2658_s11 = sld [smem:[#allocation14_spill]] }
  0x78   : > { %1672 = vmatprep.subr.bf16.mxu0 %v1873_v4  ;;  %v753_v41 = vrot.slane %v744_v39, %v752_v40  ;;  %v2427_v42 = vld [vmem:[%s2627_s4] ss:$0 sm:$0xff]  ;;  %v749_v3 = vrot.slane %v744_v39, %v748_v56  ;;  %s1421_s22 = sshll.u32 %s459_s29, 4  ;;  %p2659_p1 = scmp.ne.s32.totalorder %s2651_s28, 0  ;;  %s2573_s22 = int_to_ptr.vmem [resolvable:$true] %s1421_s22 }
  0x79   : > { %841 = vmatpush1.bf16.msra.mxu1 %v1892_v14  ;;  %s2026_s15 = scalar_lea.vmem %s2573_s22, 256  ;;  %s2110_s21 = smov [#allocation8]  }
  0x7a   : > { %842 = vmatprep.subr.bf16.mxu1 %v1895_v15  ;;  %p2027_p0 = scmp.ne.s32.totalorder %s2573_s22, %s2026_s15  ;;  %s2030_s27 = sshll.u32 %s2110_s21, 4  ;;  %s2031_s27 = int_to_ptr.vmem [resolvable:$false] %s2030_s27 }
  0x7b   : > { %1673 = vmatpush3.bf16.msra.mxu0 %v1873_v4  ;;  %p2033_p9 = scmp.lt.s32.totalorder %s2573_s22, %s2031_s27 }
  0x7c   : > { %1674 = vmatprep.subr.bf16.mxu0 %v1874_v6  ;;  %p2028_p3 = pnand %p2027_p0, %p2659_p1 }
  0x7d   : > { %843 = vmatpush1.bf16.msra.mxu1 %v1897_v17 }
  0x7e   : > { %844 = vmatprep.subr.bf16.mxu1 %v1898_v18  ;;  %p2029_p5 = pneg %p2028_p3 }
  0x7f   : > { %1675 = vmatpush3.bf16.msra.mxu0 %v1874_v6 }
  0x80   : > { %1676 = vmatprep.subr.bf16.mxu0 %v1875_v9 }
  0x81   : > { %845 = vmatpush1.bf16.msra.mxu1 %v1900_v19 }
  0x82   : > { %846 = vmatprep.subr.bf16.mxu1 %v1901_v21 }
  0x83   : > { %1677 = vmatpush3.bf16.msra.mxu0 %v1875_v9 }
  0x84   : > { %1678 = vmatprep.subr.bf16.mxu0 %v1876_v13 }
  0x85   : > { %847 = vmatpush1.bf16.msra.mxu1 %v1903_v23 }
  0x86   : > { %848 = vmatprep.subr.bf16.mxu1 %v1904_v24 }
  0x87   : > { %1679 = vmatpush3.bf16.msra.mxu0 %v1876_v13 }
  0x88   : > { %1680 = vmatprep.subr.bf16.mxu0 %v1877_v16 }
  0x89   : > { %849 = vmatpush1.bf16.msra.mxu1 %v1906_v25 }
  0x8a   : > { %850 = vmatprep.subr.bf16.mxu1 %v1907_v27 }
  0x8b   : > { %1681 = vmatpush3.bf16.msra.mxu0 %v1877_v16 }
  0x8c   : > { %1698 = vmatprep.subr.bf16.mxu0 %v2106_v36 }
  0x8d   : > { %851 = vmatpush1.bf16.msra.mxu1 %v1909_v29 }
  0x8e   : > { %1683 = vmatmul.mubr.bf16.vlgmr.msra.gmra.mrb[0].mxu0 %v1879_v20  ;;  %1718 = vmatprep.subr.bf16.mxu1 %v2106_v36 }
  0x8f   : > { %1686 = vmatprep.mubr.bf16.mxu0 %v1880_v22 }
  0x90   : > { %869 = vmatmul.mubr.bf16.vlgmr.msra.gmra.mrb[0].mxu1 %v2408_v32 }
  0x91   : > { %1734 = vmatprep.mubr.msk.bf16.mxu1 %vm2107_vm0, %v2106_v36 }
  0x96   : > { %1687 = vmatmul.mubr.bf16.gmra.mrb[4].mxu0 %v1881_v26 }
  0x97   : > { %1690 = vmatprep.mubr.bf16.mxu0 %v1882_v28 }
  0x9e   : > { %1691 = vmatmul.mubr.bf16.gmra.mrb[8].mxu0 %v1883_v33 }
  0x9f   : > { %1694 = vmatprep.mubr.bf16.mxu0 %v1893_v34 }
  0xa6   : > { %1695 = vmatmul.mubr.bf16.gmra.mrb[12].mxu0 %v1894_v35 }
  0xa7   : > { %1714 = vmatprep.mubr.msk.bf16.mxu0 %vm2107_vm0, %v2106_v36 }
 0x161   : > { %v1684_v43 = vpop.f32.mrb[0].mxu0 }
 0x162   : > { %v650_v44 = vadd.f32 %v1684_v43, %v2427_v42  ;;  %v641_v45 = vpop.f32.mrb[1].mxu0 }
 0x163   : > { %v642_v46 = vadd.f32 %v2427_v42, %v641_v45  ;;  %v1685_v47 = vpop.f32.mrb[2].mxu0  ;;  %v870_v8 = vpop.f32.mrb[0].mxu1 }
 0x164   : > { %v653_v48 = vadd.f32 %v1685_v47, %v2427_v42  ;;  %v644_v49 = vpop.f32.mrb[3].mxu0  ;;  %v706_v51 = vmax.f32 %v650_v44, 0.0  ;;  %v871_v10 = vadd.f32 %v870_v8, %v749_v3  ;;  %v872_v11 = vpop.f32.mrb[1].mxu1 }
 0x165   : > { %v645_v50 = vadd.f32 %v2427_v42, %v644_v49  ;;  %v704_v53 = vmax.f32 %v642_v46, 0.0  ;;  %v2441_v14 = vadd.f32 %v872_v11, %v753_v41  ;;  %v874_v15 = vpop.f32.mrb[2].mxu1  ;;  %v1584_v11 = vld [vmem:[%s462_s17] ss:$0 sm:$0xff]  ;;  %s2032_s17 = scalar_lea.vmem %s2031_s27, 512 }
 0x166   : > { %v707_v52 = vmax.f32 %v653_v48, 0.0  ;;  %v879_v18 = vmax.f32 %v871_v10, 0.0  ;;  %v875_v19 = vadd.f32 %v874_v15, %v749_v3  ;;  %v876_v20 = vpop.f32.mrb[3].mxu1  ;;  %p2034_p12 = scmp.lt.s32.totalorder %s2032_s17, %s2026_s15 }
 0x167   : > { %v705_v54 = vmax.f32 %v645_v50, 0.0  ;;  %v2446_v24 = vadd.f32 %v876_v20, %v753_v41 }
 0x168   : > { %v721_v55 = vpack.c.bf16 %v707_v52, %v706_v51  ;;  %v880_v28 = vmax.f32 %v875_v19, 0.0  ;;  %p2035_p2 = por %p2034_p12, %p2033_p9 }
 0x169   : > { %v720_v57 = vpack.c.bf16 %v705_v54, %v704_v53  ;;  %v1688_v58 = vpop.f32.mrb[4].mxu0 }
 0x16a   : > { %v666_v59 = vadd.f32 %v1688_v58, %v2427_v42  ;;  %v657_v60 = vpop.f32.mrb[5].mxu0  ;;  %v890_v21 = vsel %vm882_vm1, %v721_v55, 0  ;;  %v2452_v35 = vpack.c.bf16 %v880_v28, %v879_v18  ;;  %p2036_p13 = pnand %p2035_p2, %p2029_p5 }
 0x16b   : > { %v658_v61 = vadd.f32 %v2427_v42, %v657_v60  ;;  %1719 = vmatpush3.bf16.msra.mxu1 %v720_v57  ;;  %v1689_v62 = vpop.f32.mrb[6].mxu0  ;;  %v887_v63 = vsel %vm882_vm1, %v720_v57, 0 }
 0x16c   : > { %v710_v0 = vmax.f32 %v666_v59, 0.0  ;;  %v669_v1 = vadd.f32 %v1689_v62, %v2427_v42  ;;  %1699 = vmatpush3.bf16.xpose.msra.mxu0 %v887_v63  ;;  %v660_v2 = vpop.f32.mrb[7].mxu0  ;;  %1720 = vmatprep.subr.bf16.mxu1 %v2106_v36 }
 0x16d   : > { %v708_v4 = vmax.f32 %v658_v61, 0.0  ;;  %v661_v5 = vadd.f32 %v2427_v42, %v660_v2  ;;  %1700 = vmatprep.subr.bf16.mxu0 %v2106_v36  ;;  %v2480_v61 = vand.u32 127, %v746_v37 }
 0x16e   : > { %v711_v6 = vmax.f32 %v669_v1, 0.0 }
 0x16f   : > { %v709_v7 = vmax.f32 %v661_v5, 0.0  ;;  %1721 = vmatpush3.bf16.msra.mxu1 %v721_v55  ;;  %vm953_vm2 = vcmp.lt.s32.totalorder %v2480_v61, 20 }
 0x170   : > { %v723_v9 = vpack.c.bf16 %v711_v6, %v710_v0  ;;  %1722 = vmatprep.subr.bf16.mxu1 %v2106_v36 }
 0x171   : > { %v722_v12 = vpack.c.bf16 %v709_v7, %v708_v4  ;;  %v1692_v13 = vpop.f32.mrb[8].mxu0 }
 0x172   : > { %v682_v16 = vadd.f32 %v1692_v13, %v2427_v42  ;;  %v673_v17 = vpop.f32.mrb[9].mxu0  ;;  %v896_v57 = vsel %vm882_vm1, %v723_v9, 0 }
 0x173   : > { %1723 = vmatpush3.bf16.msra.mxu1 %v722_v12  ;;  %v674_v22 = vadd.f32 %v2427_v42, %v673_v17  ;;  %v1693_v23 = vpop.f32.mrb[10].mxu0  ;;  %v893_v45 = vsel %vm882_vm1, %v722_v12, 0 }
 0x174   : > { %1701 = vmatpush3.bf16.xpose.msra.mxu0 %v890_v21  ;;  %1724 = vmatprep.subr.bf16.mxu1 %v2106_v36  ;;  %v714_v25 = vmax.f32 %v682_v16, 0.0  ;;  %v685_v26 = vadd.f32 %v1693_v23, %v2427_v42  ;;  %v676_v27 = vpop.f32.mrb[11].mxu0 }
 0x175   : > { %v712_v29 = vmax.f32 %v674_v22, 0.0  ;;  %1702 = vmatprep.subr.bf16.mxu0 %v2106_v36  ;;  %v677_v33 = vadd.f32 %v2427_v42, %v676_v27 }
 0x176   : > { %v715_v34 = vmax.f32 %v685_v26, 0.0 }
 0x177   : > { %1725 = vmatpush3.bf16.msra.mxu1 %v723_v9  ;;  %v713_v38 = vmax.f32 %v677_v33, 0.0 }
 0x178   : > { %v725_v39 = vpack.c.bf16 %v715_v34, %v714_v25  ;;  %1726 = vmatprep.subr.bf16.mxu1 %v2106_v36 }
 0x179   : > { %v724_v40 = vpack.c.bf16 %v713_v38, %v712_v29  ;;  %v1696_v41 = vpop.f32.mrb[12].mxu0 }
 0x17a   : > { %v698_v43 = vadd.f32 %v1696_v41, %v2427_v42  ;;  %v689_v44 = vpop.f32.mrb[13].mxu0  ;;  %v902_v58 = vsel %vm882_vm1, %v725_v39, 0 }
 0x17b   : > { %1727 = vmatpush3.bf16.msra.mxu1 %v724_v40  ;;  %v690_v46 = vadd.f32 %v2427_v42, %v689_v44  ;;  %v1697_v47 = vpop.f32.mrb[14].mxu0 }
 0x17c   : > { %1703 = vmatpush3.bf16.xpose.msra.mxu0 %v893_v45  ;;  %1728 = vmatprep.subr.bf16.mxu1 %v2106_v36  ;;  %v718_v48 = vmax.f32 %v698_v43, 0.0  ;;  %v701_v49 = vadd.f32 %v1697_v47, %v2427_v42  ;;  %v692_v50 = vpop.f32.mrb[15].mxu0 }
 0x17d   : > { %1704 = vmatprep.subr.bf16.mxu0 %v2106_v36  ;;  %v716_v51 = vmax.f32 %v690_v46, 0.0  ;;  %v693_v52 = vadd.f32 %v2427_v42, %v692_v50  ;;  %v899_v42 = vsel %vm882_vm1, %v724_v40, 0 }
 0x17e   : > { %v719_v53 = vmax.f32 %v701_v49, 0.0 }
 0x17f   : > { %1729 = vmatpush3.bf16.msra.mxu1 %v725_v39  ;;  %v717_v54 = vmax.f32 %v693_v52, 0.0 }
 0x180   : > { %v727_v55 = vpack.c.bf16 %v719_v53, %v718_v48  ;;  %1730 = vmatprep.subr.bf16.mxu1 %v2106_v36 }
 0x181   : > { %v726_v56 = vpack.c.bf16 %v717_v54, %v716_v51  ;;  %v1916_v54 = vld [vmem:[%s2633_s10] sm:$0xff]  }
 0x182   : > { %v908_v60 = vsel %vm882_vm1, %v727_v55, 0 }
 0x183   : > { %1731 = vmatpush3.bf16.msra.mxu1 %v726_v56  ;;  %v905_v59 = vsel %vm882_vm1, %v726_v56, 0  ;;  %v1918_v56 = vld [vmem:[%s2633_s10 + $0x10] sm:$0xff]  }
 0x184   : > { %1705 = vmatpush3.bf16.xpose.msra.mxu0 %v896_v57  ;;  %1732 = vmatprep.subr.bf16.mxu1 %v2106_v36  ;;  %v1919_v57 = vld [vmem:[%s2633_s10 + $0x18] sm:$0xff]  }
 0x185   : > { %1706 = vmatprep.subr.bf16.mxu0 %v2106_v36 }
 0x187   : > { %1733 = vmatpush3.bf16.msra.mxu1 %v727_v55  ;;  %v1917_v55 = vld [vmem:[%s2633_s10 + $0x8] sm:$0xff]  }
 0x188   : > { %1738 = vmatprep.subr.bf16.mxu1 %v2106_v36 }
 0x18c   : > { %1707 = vmatpush3.bf16.xpose.msra.mxu0 %v899_v42  ;;  %v1920_v42 = vld [vmem:[%s2633_s10 + $0x20] sm:$0xff]  }
 0x18d   : > { %1708 = vmatprep.subr.bf16.mxu0 %v2106_v36 }
 0x194   : > { %1709 = vmatpush3.bf16.xpose.msra.mxu0 %v902_v58  ;;  %v1921_v58 = vld [vmem:[%s2633_s10 + $0x28] sm:$0xff]  }
 0x195   : > { %1710 = vmatprep.subr.bf16.mxu0 %v2106_v36 }
 0x19c   : > { %1711 = vmatpush3.bf16.xpose.msra.mxu0 %v905_v59  ;;  %v1922_v59 = vld [vmem:[%s2633_s10 + $0x30] sm:$0xff]  }
 0x19d   : > { %1712 = vmatprep.subr.bf16.mxu0 %v2106_v36 }
 0x1a4   : > { %1713 = vmatpush3.bf16.xpose.msra.mxu0 %v908_v60 }
 0x1a5   : > { %1770 = vmatprep.subr.bf16.mxu0 %v2106_v36 }
 0x1ab   : > { %1715 = vmatmul.mubr.msk.bf16.vlgmr.msra.gmra.mrb[16].mxu0 %vm882_vm1, %v2452_v35 }
 0x1ac   : > { %1786 = vmatprep.mubr.msk.bf16.mxu0 %vm2107_vm0, %v2106_v36  ;;  %1771 = vmatpush3.bf16.msra.mxu0 %v1916_v54 }
 0x1ad   : > { %1772 = vmatprep.subr.bf16.mxu0 %v2106_v36 }
 0x1b0   : > { %1773 = vmatpush3.bf16.msra.mxu0 %v1917_v55 }
 0x1b1   : > { %1774 = vmatprep.subr.bf16.mxu0 %v2106_v36 }
 0x1b4   : > { %1775 = vmatpush3.bf16.msra.mxu0 %v1918_v56 }
 0x1b5   : > { %1776 = vmatprep.subr.bf16.mxu0 %v2106_v36 }
 0x1b8   : > { %1777 = vmatpush3.bf16.msra.mxu0 %v1919_v57 }
 0x1b9   : > { %1778 = vmatprep.subr.bf16.mxu0 %v2106_v36 }
 0x1bc   : > { %1779 = vmatpush3.bf16.msra.mxu0 %v1920_v42 }
 0x1bd   : > { %1780 = vmatprep.subr.bf16.mxu0 %v2106_v36 }
 0x1c0   : > { %1781 = vmatpush3.bf16.msra.mxu0 %v1921_v58 }
 0x1c1   : > { %1782 = vmatprep.subr.bf16.mxu0 %v2106_v36 }
 0x1c4   : > { %1783 = vmatpush3.bf16.msra.mxu0 %v1922_v59 }
 0x1c5   : > { %1784 = vmatprep.subr.bf16.mxu0 %v2106_v36 }
 0x27e   : > { %v944_v62 = vpop.f32.mrb[16].mxu0 }
 0x27f   : > { %v1716_v63 = vpop.f32.mrb[17].mxu0  ;;  %v954_v0 = vsel %vm953_vm2, %v944_v62, -1e+30 }
 0x280   : > { %956 = vmax.xlane.f32.xlu0 %v954_v0  ;;  %v947_v1 = vpop.f32.mrb[18].mxu0 }
 0x281   : > { %v1717_v2 = vpop.f32.mrb[19].mxu0  ;;  %v955_v3 = vsel %vm953_vm2, %v947_v1, -1e+30 }
 0x282   : > { %v1910_v2 = vld [vmem:[#allocation7] sm:$0xff]  }
 0x284   : > { %958 = vmax.xlane.f32.xlu0 %v955_v3 }
 0x29a   : > { %1019 = vrot.lane.b32.xlu0 %v2452_v35, %s2108_s24  ;;  %s2579_s24 = scalar_lea.hbm %s2658_s11, %s1610_s26 }
 0x30d   : > { %v957_v4 = vpop.xlane.xlu0 %956 }
 0x30e   : > { %v960_v5 = vsub.f32 %v954_v0, %v957_v4  ;;  %v1911_v4 = vld [vmem:[#allocation7 + $0x8] sm:$0xff]  }
 0x310   : > { %v962_v6 = vmul.f32 1.442695, %v960_v5  ;;  %v1912_v5 = vld [vmem:[#allocation7 + $0x10] ss:$0 sps:$4 sm:$0xff]  }
 0x311   : > { %v959_v7 = vpop.xlane.xlu0 %958 }
 0x312   : > { %1924 = vpow2.f32 %v962_v6  ;;  %v961_v37 = vsub.f32 %v955_v3, %v959_v7  ;;  %v1178_v6 = vsel %vm1176_vm5, %v1912_v5, 0  ;;  %v1913_v7 = vld [vmem:[%s2630_s7] sm:$0xff]  }
 0x314   : > { %v964_v8 = vmul.f32 1.442695, %v961_v37  ;;  %v1914_v37 = vld [vmem:[%s2630_s7 + $0x8] sm:$0xff]  }
 0x315   : > { %v1020_v19 = vpop.permute.xlu0 %1019 }
 0x316   : > { %1926 = vpow2.f32 %v964_v8  ;;  %v1025_v21 = vsel %vm882_vm1, %v1020_v19, 0  ;;  %v1915_v8 = vld [vmem:[%s2630_s7 + $0x10] ss:$0 sps:$4 sm:$0xff]  }
 0x31c   : > { %v1925_v9 = vpop.eup %1924 }
 0x31d   : > { %966 = vadd.xlane.f32.xlu1 %v1925_v9 }
 0x320   : > { %v1927_v10 = vpop.eup %1926 }
 0x321   : > { %968 = vadd.xlane.f32.xlu1 %v1927_v10 }
 0x332   : > { %1017 = vrot.lane.b32.xlu1 %v2452_v35, %s2109_s23  ;;  %s1408_s23 = scalar_lea.sflag [#allocation4], %s2351_s12 }
 0x336   : > { %1074 = vperm.xlu1 %1868, %v1584_v11  }
 0x3aa   : > { %v967_v12 = vpop.xlane.xlu1 %966 }
 0x3ab   : > { %1928 = vrcp.f32 %v967_v12 }
 0x3ae   : > { %v969_v13 = vpop.xlane.xlu1 %968 }
 0x3af   : > { %1930 = vrcp.f32 %v969_v13 }
 0x3b2   : > { %v1018_v22 = vpop.permute.xlu1 %1017 }
 0x3b5   : > { %v1929_v15 = vpop.eup %1928 }
 0x3b6   : > { %v972_v17 = vmul.f32 %v1929_v15, %v1925_v9  ;;  %v1075_v29 = vpop.permute.xlu1 %1074  ;;  %v1237_v9 = vsel %vm1176_vm5, %v1915_v8, 0 }
 0x3b7   : > { %vm1076_vm3 = vcmp.lt.s32.totalorder %v2480_v61, %v1075_v29 }
 0x3b9   : > { %v1931_v16 = vpop.eup %1930 }
 0x3ba   : > { %v973_v18 = vmul.f32 %v1931_v16, %v1927_v10  ;;  %v1923_v10 = vld [vmem:[%s2633_s10 + $0x38] sm:$0xff]  }
 0x3bb   : > { %1785 = vmatpush3.bf16.msra.mxu0 %v1923_v10 }
 0x3bc   : > { %v974_v20 = vpack.c.bf16 %v973_v18, %v972_v17 }
 0x3be   : > { %1735 = vmatmul.mubr.bf16.vlgmr.msra.gmra.mrb[4].mxu1 %v974_v20 }
 0x3bf   : > { %1739 = vmatpush3.bf16.xpose.msra.mxu1 %v1025_v21  ;;  %1740 = vmatprep.mubr.msk.bf16.mxu1 %vm2107_vm0, %v2106_v36 }
 0x3c0   : > { %1744 = vmatprep.subr.bf16.mxu1 %v2106_v36 }
 0x3c6   : > { %1741 = vmatmul.mubr.msk.bf16.vlgmr.msra.gmra.mrb[8].mxu1 %vm882_vm1, %v1018_v22 }
 0x3c7   : > { %1745 = vmatpush3.bf16.msra.mxu1 %v2408_v32  ;;  %1746 = vmatprep.mubr.msk.bf16.mxu1 %vm2107_vm0, %v2106_v36 }
 0x3c8   : > { %1750 = vmatprep.subr.bf16.mxu1 %v2106_v36 }
 0x491   : > { %v2498_v23 = vpop.f32.mrb[4].mxu1 }
 0x492   : > { %v1736_v25 = vpop.f32.mrb[5].mxu1 }
 0x493   : > { %v2500_v26 = vpop.f32.mrb[6].mxu1 }
 0x494   : > { %v1147_v27 = vpack.c.bf16 %v2500_v26, %v2498_v23  ;;  %v1737_v28 = vpop.f32.mrb[7].mxu1  ;;  %v1594_v26 = vld [vmem:[%s2632_s9] ss:$0 sm:$0xff] }
 0x499   : > { %v1061_v33 = vpop.f32.mrb[8].mxu1 }
 0x49a   : > { %v1077_v32 = vsel %vm1076_vm3, %v1061_v33, -1e+30  ;;  %v1742_v34 = vpop.f32.mrb[9].mxu1 }
 0x49b   : > { %v1064_v38 = vpop.f32.mrb[10].mxu1  ;;  %v1080_v39 = vsel %vm1079_vm4, %v1077_v32, -inf }
 0x49c   : > { %v1078_v40 = vsel %vm1076_vm3, %v1064_v38, -1e+30  ;;  %1081 = vmax.xlane.f32.xlu1 %v1080_v39  ;;  %v1743_v41 = vpop.f32.mrb[11].mxu1 }
 0x49d   : > { %v1083_v43 = vsel %vm1079_vm4, %v1078_v40, -inf }
 0x49e   : > { %1084 = vmax.xlane.f32.xlu0 %v1083_v43 }
 0x529   : > { %v1082_v44 = vpop.xlane.xlu1 %1081 }
 0x52a   : > { %v1086_v45 = vsub.f32 %v1077_v32, %v1082_v44 }
 0x52b   : > { %v1085_v46 = vpop.xlane.xlu0 %1084 }
 0x52c   : > { %v1088_v47 = vmul.f32 1.442695, %v1086_v45  ;;  %v1087_v48 = vsub.f32 %v1078_v40, %v1085_v46 }
 0x52e   : > { %1932 = vpow2.f32 %v1088_v47  ;;  %v1090_v49 = vmul.f32 1.442695, %v1087_v48 }
 0x530   : > { %1934 = vpow2.f32 %v1090_v49 }
 0x538   : > { %v1933_v50 = vpop.eup %1932 }
 0x539   : > { %v1092_v51 = vsel %vm1079_vm4, %v1933_v50, 0.0 }
 0x53a   : > { %v1935_v52 = vpop.eup %1934  ;;  %1093 = vadd.xlane.f32.xlu0 %v1092_v51 }
 0x53b   : > { %v1095_v53 = vsel %vm1079_vm4, %v1935_v52, 0.0 }
 0x53e   : > { %1096 = vadd.xlane.f32.xlu0 %v1095_v53 }
 0x5c7   : > { %v1094_v60 = vpop.xlane.xlu0 %1093 }
 0x5c8   : > { %1936 = vrcp.f32 %v1094_v60 }
 0x5cb   : > { %v1097_v61 = vpop.xlane.xlu0 %1096 }
 0x5cc   : > { %1938 = vrcp.f32 %v1097_v61 }
 0x5d2   : > { %v1937_v62 = vpop.eup %1936 }
 0x5d3   : > { %v1100_v0 = vmul.f32 %v1937_v62, %v1933_v50 }
 0x5d6   : > { %v1939_v63 = vpop.eup %1938 }
 0x5d7   : > { %v1101_v1 = vmul.f32 %v1939_v63, %v1935_v52 }
 0x5d9   : > { %v1102_v3 = vpack.c.bf16 %v1101_v1, %v1100_v0 }
 0x5db   : > { %1747 = vmatmul.mubr.msk.bf16.vlgmr.msra.gmra.mrb[12].mxu1 %vm1079_vm4, %v1102_v3 }
 0x5dc   : > { %1751 = vmatpush3.bf16.msra.mxu1 %v1910_v2  ;;  %1756 = vmatprep.mubr.msk.bf16.mxu1 %vm2107_vm0, %v2106_v36 }
 0x5dd   : > { %1752 = vmatprep.subr.bf16.mxu1 %v2106_v36 }
 0x5e0   : > { %1753 = vmatpush3.bf16.msra.mxu1 %v1911_v4 }
 0x5e1   : > { %1754 = vmatprep.subr.bf16.mxu1 %v2106_v36 }
 0x5e4   : > { %1755 = vmatpush3.bf16.msra.mxu1 %v1178_v6 }
 0x5e5   : > { %1760 = vmatprep.subr.bf16.mxu1 %v2106_v36 }
 0x5e7   : > { %1757 = vmatmul.mubr.msk.bf16.vlgmr.msra.gmra.mrb[16].mxu1 %vm882_vm1, %v1147_v27 }
 0x5e8   : > { %1761 = vmatpush3.bf16.msra.mxu1 %v1913_v7  ;;  %1766 = vmatprep.mubr.msk.bf16.mxu1 %vm2107_vm0, %v2106_v36 }
 0x5e9   : > { %1762 = vmatprep.subr.bf16.mxu1 %v2106_v36 }
 0x5ec   : > { %1763 = vmatpush3.bf16.msra.mxu1 %v1914_v37 }
 0x5ed   : > { %1764 = vmatprep.subr.bf16.mxu1 %v2106_v36 }
 0x5f0   : > { %1765 = vmatpush3.bf16.msra.mxu1 %v1237_v9 }
 0x5f3   : > { %1767 = vmatmul.mubr.msk.bf16.vlgmr.msra.gmra.mrb[20].mxu1 %vm882_vm1, %v2452_v35 }
 0x6ae   : > { %v1140_v11 = vpop.f32.mrb[12].mxu1 }
 0x6af   : > { %v1748_v12 = vpop.f32.mrb[13].mxu1 }
 0x6b0   : > { %v1143_v13 = vpop.f32.mrb[14].mxu1 }
 0x6b1   : > { %v1291_v15 = vpack.c.bf16 %v1143_v13, %v1140_v11  ;;  %v1749_v16 = vpop.f32.mrb[15].mxu1 }
 0x6b3   : > { %1787 = vmatmul.mubr.bf16.vlgmr.msra.gmra.mrb[20].mxu0 %v1291_v15 }
 0x6ba   : > { %v1214_v17 = vpop.f32.mrb[16].mxu1 }
 0x6bb   : > { %v1758_v18 = vpop.f32.mrb[17].mxu1 }
 0x6bc   : > { %v1217_v36 = vpop.f32.mrb[18].mxu1 }
 0x6bd   : > { %v1759_v19 = vpop.f32.mrb[19].mxu1 }
 0x6c6   : > { %v1273_v20 = vpop.f32.mrb[20].mxu1 }
 0x6c7   : > { %v1274_v21 = vadd.f32 %v1273_v20, %v1214_v17  ;;  %v1768_v22 = vpop.f32.mrb[21].mxu1 }
 0x6c8   : > { %v1276_v35 = vpop.f32.mrb[22].mxu1 }
 0x6c9   : > { %v1277_v23 = vadd.f32 %v1276_v35, %v1217_v36  ;;  %v1769_v25 = vpop.f32.mrb[23].mxu1  ;;  %v1287_v27 = vadd.f32 %v1594_v26, %v1274_v21 }
 0x6cb   : > { %v1288_v28 = vadd.f32 %v1594_v26, %v1277_v23  ;;  %v1289_v29 = vmax.f32 %v1287_v27, 0.0 }
 0x6cd   : > { %v1290_v32 = vmax.f32 %v1288_v28, 0.0  ;;  %v1401_v41 = vadd.f32 %v1289_v29, %v2402_v30 }
 0x6cf   : > { %v1402_v46 = vadd.f32 %v1290_v32, %v2404_v31 }
 0x786   : > { %v1390_v33 = vpop.f32.mrb[20].mxu0 }
 0x787   : > { %v1397_v34 = vadd.f32 %v1390_v33, %v2441_v14  ;;  %v1788_v38 = vpop.f32.mrb[21].mxu0 }
 0x788   : > { %v1393_v39 = vpop.f32.mrb[22].mxu0 }
 0x789   : > { %v1399_v40 = vmax.f32 %v1397_v34, 0.0  ;;  %v1398_v43 = vadd.f32 %v1393_v39, %v2446_v24  ;;  %v1789_v44 = vpop.f32.mrb[23].mxu0 }
 0x78b   : > { %v1403_v45 = vadd.f32 %v1401_v41, %v1399_v40  ;;  %v1400_v14 = vmax.f32 %v1398_v43, 0.0 }
 0x78d   : > { %1405 = vst [vmem:[%s459_s29] sm:$0xff] %v1403_v45  ;;  %v1404_v30 = vadd.f32 %v1402_v46, %v1400_v14 }
 0x78f   : > { %1406 = vst [vmem:[%s459_s29 + $0x8] sm:$0xff] %v1404_v30 }
 0x790   : > { %2039 = shalt.err (!%p2036_p13)
}
 0x791   : > { %s2040_s14 = scalar_lea.hbm %s2579_s24, 256  ;;  %s2044_s25 = scalar_lea.hbm %s2658_s11, 512 }
 0x792   : > { %p2041_p6 = scmp.ne.s32.totalorder %s2579_s24, %s2040_s14  ;;  %p2045_p7 = scmp.lt.u32.totalorder %s2579_s24, %s2658_s11 }
 0x793   : > { %p2046_p8 = scmp.lt.u32.totalorder %s2044_s25, %s2040_s14  ;;  %p2048_p0 = scmp.lt.u32.totalorder %s2040_s14, %s2579_s24 }
 0x794   : > { %p2042_p10 = pnand %p2041_p6, %p2659_p1 }
 0x795   : > { %p2047_p11 = por %p2046_p8, %p2045_p7 }
 0x796   : > { %p2043_p4 = pneg %p2042_p10 }
 0x797   : > { %p2049_p3 = por %p2048_p0, %p2047_p11 }
 0x799   : > { %p2050_p5 = pnand %p2049_p3, %p2043_p4 }
 0x79b   : > { %2053 = shalt.err (!%p2050_p5)
}
 0x79c   : > { %s2111_s15 = smov 128   ;;  %s2112_s27 = smov 8  }
 0x79d   : > { %1800 = dma.vmem_to_hbm [thread:$0]  (%p2659_p1), %s2573_s22, 256, %s2579_s24, %s1408_s23, %s2111_s15, %s2111_s15, %s2112_s27  }
 0x79e PF: > { %s2660_s17 = sld [smem:[#allocation12_spill]]  ;;  %s2661_s29 = sld [smem:[#allocation13_spill]] }
 0x79f   : > { %p2663_p12 = scmp.ge.s32.totalorder %s2096_s20, 2 }
 0x7a4   : > { %s1436_s26 = sand.u32 1, %s2660_s17   ;;  %p2662_p9 = scmp.ne.s32.totalorder %s2661_s29, 0 }
 0x7a5   : > { %s1437_s14 = scalar_lea.sflag [#allocation4], %s1436_s26 }
 0x7a6   : > { %p1814_p2 = pnand %p2663_p12, %p2662_p9 }
 0x7a8   : > { %2079 = dma.done.wait (!%p1814_p2), %s1437_s14, 256  }
 0x7a9   : > { %2081 = vsyncadd (!%p1814_p2), %s1437_s14, 4294967040  ;;  %p25_p13 = scmp.ge.s32.totalorder %s2286_s13, 4   ;;  %s2664_s17 = smov %s2088_s18 }
 0x7aa   : > { %s2665_s18 = smov %s2092_s19  ;;  %s2666_s19 = smov %s2295_s16 }
 0x7ab   : > { %s2667_s20 = smov %s2286_s13  ;;  %27 = sbr.rel (!%p25_p13) target bundleno = 8 (0x8), region = 123 }
 0x7b2   :  { %1442 = vsyncpa [#allocation3], 1 }
 0x7b3   :  { %1444 = vsyncpa [#allocation3 + $0x1], 1 }
 0x7b4   :  { %1445 = vsyncpa [#allocation6], 1 }
 0x7b5   :  { %1446 = vsyncpa [#allocation4], 1 }
 0x7b6   :  { %1448 = vsyncpa [#allocation4 + $0x1], 1 }

</bundles_post_ra>
